<compile_context>
chip_gen: v7x
topology: tpu7x:2x2x1
jax: 0.10.0
libtpu: 0.0.40
codegen_flags: <defaults>
</compile_context>

<pallas_src>
import functools

import jax
import jax.numpy as jnp
from jax import lax
from jax.experimental import pallas as pl
from jax.experimental.pallas import tpu as pltpu

_LANES = 128
_SUBLANES = 8
_BLOCK_TARGET_BYTES = 4 * 1024 * 1024   # per-input, per-block VMEM target
_CHUNK_TARGET_BYTES = 1 * 1024 * 1024   # f32 intermediates per inner chunk
_VMEM_LIMIT_BYTES = 32 * 1024 * 1024    # 2 inputs x 2 bufs x 4 MiB + scratch


def _ceil_div(a, b):
    return -(-a // b)


def _round_up(a, b):
    return _ceil_div(a, b) * b


def _num_tensorcore_splits():
    """2-way 'parallel' split only on chips with two TensorCores (v7x)."""
    try:
        kind = jax.devices()[0].device_kind.lower()
    except Exception:  # pragma: no cover - non-TPU / interpret fallbacks
        return 1
    return 2 if "v7" in kind else 1


def _pick_lane_dim(n):
    """Pick a free (bitcast-reshape) 2-D factorization n = M * L.

    Returns (L, use_pad).  use_pad=True is a rare fallback (no divisor of n
    gives >= 50% lane utilisation, e.g. prime-sized 1-D inputs): pad the flat
    array up to a multiple of 128 and mask the ragged tail in-kernel.
    """
    if n % _LANES == 0:
        return _LANES, False
    best_l, best_u = 1, 0.0
    for d in range(1, min(n, 1024) + 1):
        if n % d:
            continue
        u = d / float(_round_up(d, _LANES))
        if u >= best_u:
            best_l, best_u = d, u
    if best_u >= 0.5:
        return best_l, False
    return _LANES, True


def _dice_partial_kernel(x_ref, t_ref, out_ref, *,
                         blocks_per_split, total_blocks, chunk_rows,
                         num_chunks, lanes, rows_full_last, last_lanes,
                         needs_mask, can_overhang):
    i = pl.program_id(1)            # streaming block index ("arbitrary")

    @pl.when(i == 0)
    def _():
        out_ref[...] = jnp.zeros_like(out_ref)

    def chunk_sums(r0, masked):
        x = x_ref[pl.ds(r0, chunk_rows), :].astype(jnp.float32)
        t = t_ref[pl.ds(r0, chunk_rows), :].astype(jnp.float32)
        # sigmoid(x) == 0.5 * tanh(0.5 * x) + 0.5  -> single EUP op per vreg.
        s = 0.5 * jnp.tanh(0.5 * x) + 0.5
        if masked:
            rows = lax.broadcasted_iota(jnp.int32, (chunk_rows, lanes), 0) + r0
            m = rows < rows_full_last
            if last_lanes:
                cols = lax.broadcasted_iota(jnp.int32, (chunk_rows, lanes), 1)
                m = m | ((rows == rows_full_last) & (cols < last_lanes))
            s = jnp.where(m, s, 0.0)
            t = jnp.where(m, t, 0.0)

        def fold(v):  # (chunk_rows, lanes) -> (8, lanes); pure VPU adds
            return v.reshape(chunk_rows // _SUBLANES, _SUBLANES, lanes).sum(0)

        return fold(s * t), fold(s), fold(t)

    def accumulate(n_loop_chunks, boundary_chunk):
        acc = (jnp.zeros((_SUBLANES, lanes), jnp.float32),
               jnp.zeros((_SUBLANES, lanes), jnp.float32),
               jnp.zeros((_SUBLANES, lanes), jnp.float32))

        if n_loop_chunks > 0:
            def body(j, carry):
                a0, a1, a2 = carry
                r0 = pl.multiple_of(j * chunk_rows, _SUBLANES)
                d0, d1, d2 = chunk_sums(r0, masked=False)
                return a0 + d0, a1 + d1, a2 + d2

            acc = lax.fori_loop(0, n_loop_chunks, body, acc)

        if boundary_chunk is not None:   # static chunk index, masked
            d0, d1, d2 = chunk_sums(boundary_chunk * chunk_rows, masked=True)
            acc = (acc[0] + d0, acc[1] + d1, acc[2] + d2)

        out_ref[0, 0] += acc[0]   # sum(sigmoid(x) * t)
        out_ref[0, 1] += acc[1]   # sum(sigmoid(x))
        out_ref[0, 2] += acc[2]   # sum(t)

    if not needs_mask and not can_overhang:
        accumulate(num_chunks, None)
        return

    b = pl.program_id(0) * blocks_per_split + i   # global row-block index

    @pl.when(b < total_blocks - 1)
    def _():
        accumulate(num_chunks, None)

    n_full = rows_full_last // chunk_rows
    boundary = (n_full
                if (rows_full_last % chunk_rows != 0 or last_lanes > 0)
                else None)

    @pl.when(b == total_blocks - 1)
    def _():
        if needs_mask:
            accumulate(n_full, boundary)
        else:
            accumulate(num_chunks, None)
    # b > total_blocks - 1 (overhang duplicate on the parallel split): skip.


def dice_loss(inputs, targets, smooth=1.0):
    """Pallas TPU implementation of DiceLoss.forward."""
    x = inputs.reshape(-1)
    t = targets.reshape(-1)
    n = int(x.size)

    lanes, use_pad = _pick_lane_dim(n)
    if use_pad:
        # TODO(synk): pays one extra HBM copy of the input; only taken when no
        # divisor of n gives decent lane utilisation (rare, e.g. prime 1-D).
        pad = (-n) % lanes
        x = jnp.concatenate([x, jnp.zeros((pad,), x.dtype)])
        t = jnp.concatenate([t, jnp.zeros((pad,), t.dtype)])
        m_rows = (n + pad) // lanes
        rows_full = n // lanes          # fully valid rows
        last_lanes = n % lanes          # valid lanes in the ragged row
    else:
        m_rows = n // lanes
        rows_full = m_rows
        last_lanes = 0

    x2 = x.reshape(m_rows, lanes)       # free bitcast reshape
    t2 = t.reshape(m_rows, lanes)

    lanes_pad = _round_up(lanes, _LANES)
    itemsize = max(x2.dtype.itemsize, t2.dtype.itemsize)

    chunk_rows = min(512, max(_SUBLANES,
                              (_CHUNK_TARGET_BYTES // (lanes_pad * 4))
                              // _SUBLANES * _SUBLANES))
    target_rows = max(_SUBLANES, _BLOCK_TARGET_BYTES // (lanes_pad * itemsize))
    if m_rows >= chunk_rows and target_rows >= chunk_rows:
        block_rows = min((target_rows // chunk_rows) * chunk_rows,
                         _round_up(m_rows, chunk_rows))
    else:
        block_rows = max(_SUBLANES,
                         min((target_rows // _SUBLANES) * _SUBLANES,
                             _round_up(m_rows, _SUBLANES)))
        chunk_rows = block_rows
    num_chunks = block_rows // chunk_rows

    total_blocks = _ceil_div(m_rows, block_rows)
    nsplit = max(1, min(_num_tensorcore_splits(), total_blocks))
    blocks_per_split = _ceil_div(total_blocks, nsplit)
    can_overhang = nsplit * blocks_per_split > total_blocks

    rows_full_last = rows_full - (total_blocks - 1) * block_rows
    needs_mask = (rows_full_last < block_rows) or (last_lanes > 0)

    kernel = functools.partial(
        _dice_partial_kernel,
        blocks_per_split=blocks_per_split, total_blocks=total_blocks,
        chunk_rows=chunk_rows, num_chunks=num_chunks, lanes=lanes,
        rows_full_last=rows_full_last, last_lanes=last_lanes,
        needs_mask=needs_mask, can_overhang=can_overhang)

    if can_overhang:
        def in_map(c, i):
            return (jnp.minimum(c * blocks_per_split + i, total_blocks - 1), 0)
    else:
        def in_map(c, i):
            return (c * blocks_per_split + i, 0)

    partials = pl.pallas_call(
        kernel,
        out_shape=jax.ShapeDtypeStruct((nsplit, 3, _SUBLANES, lanes),
                                       jnp.float32),
        grid_spec=pltpu.PrefetchScalarGridSpec(
            num_scalar_prefetch=0,
            grid=(nsplit, blocks_per_split),
            in_specs=[pl.BlockSpec((block_rows, lanes), in_map),
                      pl.BlockSpec((block_rows, lanes), in_map)],
            out_specs=pl.BlockSpec((1, 3, _SUBLANES, lanes),
                                   lambda c, i: (c, 0, 0, 0)),
        ),
        compiler_params=pltpu.CompilerParams(
            dimension_semantics=("parallel", "arbitrary"),
            vmem_limit_bytes=_VMEM_LIMIT_BYTES),
    )(x2, t2)

    sums = partials.sum(axis=(0, 2, 3))          # tiny (3,) reduce in XLA
    inter, s_in, s_tg = sums[0], sums[1], sums[2]
    dice = (2.0 * inter + smooth) / (s_in + s_tg + smooth)
    return 1.0 - dice


def _dice_loss_ref(inputs, targets, smooth=1.0):
    s = jax.nn.sigmoid(inputs.reshape(-1).astype(jnp.float32))
    t = targets.reshape(-1).astype(jnp.float32)
    inter = jnp.sum(s * t)
    dice = (2.0 * inter + smooth) / (jnp.sum(s) + jnp.sum(t) + smooth)
    return 1.0 - dice


if __name__ == "__main__":
    key = jax.random.PRNGKey(0)

    # Shapes exercise: aligned single small block; aligned rows with a partial
    # (masked) edge block; a 128-misaligned size handled via the free
    # divisor-based 2-D view (no pad copy); and a prime-sized 1-D input that
    # takes the rare pad fallback with ragged-lane masking.
    shapes = [(2, 4, 16, 16), (4, 8, 64, 132), (2, 3, 300, 301), (1031,)]
    loss_fn = jax.jit(dice_loss)
    for shape in shapes:
        k1, k2, key = jax.random.split(key, 3)
        inputs = jax.random.normal(k1, shape, dtype=jnp.float32)
        targets = (jax.random.uniform(k2, shape) > 0.5).astype(jnp.float32)

        loss = jax.block_until_ready(loss_fn(inputs, targets))
        ref = _dice_loss_ref(inputs, targets, smooth=1.0)
        assert jnp.allclose(loss, ref, rtol=1e-4, atol=1e-5), (shape, loss, ref)

    print("KERNEL_OK")
</pallas_src>

<mosaic_0001>
module attributes {stable_mosaic.version = 11 : i64} {
  func.func @_dice_partial_kernel(%arg0: i32, %arg1: i32, %arg2: memref<16x128xf32, #tpu.memory_space<vmem>>, %arg3: memref<16x128xf32, #tpu.memory_space<vmem>>, %arg4: memref<1x3x8x128xf32, #tpu.memory_space<vmem>>) attributes {dimension_semantics = [#tpu.dimension_semantics<parallel>, #tpu.dimension_semantics<arbitrary>], iteration_bounds = array<i64: 1, 1>, scalar_prefetch = 0 : i64, scratch_operands = 0 : i64, tpu.core_type = #tpu.core_type<tc>, window_params = [{transform_indices = @transform_0, window_bounds = array<i64: 16, 128>}, {transform_indices = @transform_1, window_bounds = array<i64: 16, 128>}, {transform_indices = @transform_2, window_bounds = array<i64: 1, 3, 8, 128>}]} {
    %c0_i32 = arith.constant 0 : i32
    %0 = arith.cmpi eq, %arg1, %c0_i32 : i32
    %1 = arith.extui %0 : i1 to i32
    %c0_i32_0 = arith.constant 0 : i32
    %2 = arith.cmpi ne, %1, %c0_i32_0 : i32
    scf.if %2 {
      %cst_33 = arith.constant 0.000000e+00 : f32
      %47 = vector.broadcast %cst_33 : f32 to vector<1x3x8x128xf32>
      %c0_34 = arith.constant 0 : index
      %c0_35 = arith.constant 0 : index
      %c0_36 = arith.constant 0 : index
      %c0_37 = arith.constant 0 : index
      %48 = vector.load %arg4[%c0_34, %c0_35, %c0_36, %c0_37] : memref<1x3x8x128xf32, #tpu.memory_space<vmem>>, vector<1x3x8x128xf32>
      tpu.vector_store %arg4[%c0_34, %c0_35, %c0_36, %c0_37], %47 {strides = array<i32>} : memref<1x3x8x128xf32, #tpu.memory_space<vmem>>, vector<1x3x8x128xf32>,
    } else {
    }
    %cst = arith.constant 0.000000e+00 : f32
    %3 = vector.broadcast %cst : f32 to vector<8x128xf32>
    %cst_1 = arith.constant 0.000000e+00 : f32
    %4 = vector.broadcast %cst_1 : f32 to vector<8x128xf32>
    %cst_2 = arith.constant 0.000000e+00 : f32
    %5 = vector.broadcast %cst_2 : f32 to vector<8x128xf32>
    %c0_i32_3 = arith.constant 0 : i32
    %c16_i32 = arith.constant 16 : i32
    %6 = arith.muli %c0_i32_3, %c16_i32 : i32
    %7 = tpu.assume_multiple %6, 8 : i32
    %8 = arith.index_cast %7 : i32 to index
    %c0 = arith.constant 0 : index
    %9 = vector.load %arg2[%8, %c0] : memref<16x128xf32, #tpu.memory_space<vmem>>, vector<16x128xf32>
    %10 = arith.index_cast %7 : i32 to index
    %c0_4 = arith.constant 0 : index
    %11 = vector.load %arg3[%10, %c0_4] : memref<16x128xf32, #tpu.memory_space<vmem>>, vector<16x128xf32>
    %cst_5 = arith.constant 5.000000e-01 : f32
    %12 = vector.broadcast %cst_5 : f32 to vector<16x128xf32>
    %13 = arith.mulf %12, %9 : vector<16x128xf32>
    %14 = math.tanh %13 : vector<16x128xf32>
    %cst_6 = arith.constant 5.000000e-01 : f32
    %15 = vector.broadcast %cst_6 : f32 to vector<16x128xf32>
    %16 = arith.mulf %15, %14 : vector<16x128xf32>
    %cst_7 = arith.constant 5.000000e-01 : f32
    %17 = vector.broadcast %cst_7 : f32 to vector<16x128xf32>
    %18 = arith.addf %16, %17 : vector<16x128xf32>
    %19 = arith.mulf %18, %11 : vector<16x128xf32>
    %20 = vector.shape_cast %19 : vector<16x128xf32> to vector<2x8x128xf32>
    %cst_8 = arith.constant dense<0.000000e+00> : vector<8x128xf32>
    %21 = vector.multi_reduction <add>, %20, %cst_8 [0] : vector<2x8x128xf32> to vector<8x128xf32>
    %22 = vector.shape_cast %18 : vector<16x128xf32> to vector<2x8x128xf32>
    %cst_9 = arith.constant dense<0.000000e+00> : vector<8x128xf32>
    %23 = vector.multi_reduction <add>, %22, %cst_9 [0] : vector<2x8x128xf32> to vector<8x128xf32>
    %24 = vector.shape_cast %11 : vector<16x128xf32> to vector<2x8x128xf32>
    %cst_10 = arith.constant dense<0.000000e+00> : vector<8x128xf32>
    %25 = vector.multi_reduction <add>, %24, %cst_10 [0] : vector<2x8x128xf32> to vector<8x128xf32>
    %26 = arith.addf %3, %21 : vector<8x128xf32>
    %27 = arith.addf %4, %23 : vector<8x128xf32>
    %28 = arith.addf %5, %25 : vector<8x128xf32>
    %c1_i32 = arith.constant 1 : i32
    %c0_11 = arith.constant 0 : index
    %c0_12 = arith.constant 0 : index
    %c0_13 = arith.constant 0 : index
    %c0_14 = arith.constant 0 : index
    %29 = vector.load %arg4[%c0_11, %c0_12, %c0_13, %c0_14] : memref<1x3x8x128xf32, #tpu.memory_space<vmem>>, vector<1x1x8x128xf32>
    %30 = vector.shape_cast %29 : vector<1x1x8x128xf32> to vector<8x128xf32>
    %31 = arith.addf %30, %26 : vector<8x128xf32>
    %c0_15 = arith.constant 0 : index
    %c0_16 = arith.constant 0 : index
    %c0_17 = arith.constant 0 : index
    %c0_18 = arith.constant 0 : index
    %32 = vector.load %arg4[%c0_15, %c0_16, %c0_17, %c0_18] : memref<1x3x8x128xf32, #tpu.memory_space<vmem>>, vector<1x1x8x128xf32>
    %33 = vector.shape_cast %32 : vector<1x1x8x128xf32> to vector<8x128xf32>
    %34 = vector.shape_cast %31 : vector<8x128xf32> to vector<1x1x8x128xf32>
    tpu.vector_store %arg4[%c0_15, %c0_16, %c0_17, %c0_18], %34 {strides = array<i32>} : memref<1x3x8x128xf32, #tpu.memory_space<vmem>>, vector<1x1x8x128xf32>,
    %c0_19 = arith.constant 0 : index
    %c1 = arith.constant 1 : index
    %c0_20 = arith.constant 0 : index
    %c0_21 = arith.constant 0 : index
    %35 = vector.load %arg4[%c0_19, %c1, %c0_20, %c0_21] : memref<1x3x8x128xf32, #tpu.memory_space<vmem>>, vector<1x1x8x128xf32>
    %36 = vector.shape_cast %35 : vector<1x1x8x128xf32> to vector<8x128xf32>
    %37 = arith.addf %36, %27 : vector<8x128xf32>
    %c0_22 = arith.constant 0 : index
    %c1_23 = arith.constant 1 : index
    %c0_24 = arith.constant 0 : index
    %c0_25 = arith.constant 0 : index
    %38 = vector.load %arg4[%c0_22, %c1_23, %c0_24, %c0_25] : memref<1x3x8x128xf32, #tpu.memory_space<vmem>>, vector<1x1x8x128xf32>
    %39 = vector.shape_cast %38 : vector<1x1x8x128xf32> to vector<8x128xf32>
    %40 = vector.shape_cast %37 : vector<8x128xf32> to vector<1x1x8x128xf32>
    tpu.vector_store %arg4[%c0_22, %c1_23, %c0_24, %c0_25], %40 {strides = array<i32>} : memref<1x3x8x128xf32, #tpu.memory_space<vmem>>, vector<1x1x8x128xf32>,
    %c0_26 = arith.constant 0 : index
    %c2 = arith.constant 2 : index
    %c0_27 = arith.constant 0 : index
    %c0_28 = arith.constant 0 : index
    %41 = vector.load %arg4[%c0_26, %c2, %c0_27, %c0_28] : memref<1x3x8x128xf32, #tpu.memory_space<vmem>>, vector<1x1x8x128xf32>
    %42 = vector.shape_cast %41 : vector<1x1x8x128xf32> to vector<8x128xf32>
    %43 = arith.addf %42, %28 : vector<8x128xf32>
    %c0_29 = arith.constant 0 : index
    %c2_30 = arith.constant 2 : index
    %c0_31 = arith.constant 0 : index
    %c0_32 = arith.constant 0 : index
    %44 = vector.load %arg4[%c0_29, %c2_30, %c0_31, %c0_32] : memref<1x3x8x128xf32, #tpu.memory_space<vmem>>, vector<1x1x8x128xf32>
    %45 = vector.shape_cast %44 : vector<1x1x8x128xf32> to vector<8x128xf32>
    %46 = vector.shape_cast %43 : vector<8x128xf32> to vector<1x1x8x128xf32>
    tpu.vector_store %arg4[%c0_29, %c2_30, %c0_31, %c0_32], %46 {strides = array<i32>} : memref<1x3x8x128xf32, #tpu.memory_space<vmem>>, vector<1x1x8x128xf32>,
    return
  }
  func.func @transform_0(%arg0: i32, %arg1: i32) -> (i32, i32) {
    %c1_i32 = arith.constant 1 : i32
    %0 = arith.muli %arg0, %c1_i32 : i32
    %1 = arith.addi %0, %arg1 : i32
    %c0_i32 = arith.constant 0 : i32
    %c0_i32_0 = arith.constant 0 : i32
    return %1, %c0_i32 : i32, i32
  }
  func.func @transform_1(%arg0: i32, %arg1: i32) -> (i32, i32) {
    %c1_i32 = arith.constant 1 : i32
    %0 = arith.muli %arg0, %c1_i32 : i32
    %1 = arith.addi %0, %arg1 : i32
    %c0_i32 = arith.constant 0 : i32
    %c0_i32_0 = arith.constant 0 : i32
    return %1, %c0_i32 : i32, i32
  }
  func.func @transform_2(%arg0: i32, %arg1: i32) -> (i32, i32, i32, i32) {
    %c0_i32 = arith.constant 0 : i32
    %c0_i32_0 = arith.constant 0 : i32
    %c0_i32_1 = arith.constant 0 : i32
    %c0_i32_2 = arith.constant 0 : i32
    return %arg0, %c0_i32, %c0_i32_0, %c0_i32_1 : i32, i32, i32, i32
  }
}

</mosaic_0001>

<bundles_post_ra>
// kernel: dice_loss.1
= control target key start
LH: loop header
LB: loop body
LE: loop exit
PB: predicated region body
PF: predicated region fallthrough
CT: control target
= control target key end

     0   :  { %s154_s0 = inlined_call_operand.vmem [shape: f32[16,128], index: 0, kind: input, shape index: {}]   ;;  %s155_s1 = inlined_call_operand.vmem [shape: f32[16,128], index: 1, kind: input, shape index: {}]   ;;  %s156_s2 = inlined_call_operand.vmem [shape: f32[1,3,8,128], index: 2, kind: output, shape index: {}]  }
   0x1   :  { %v62_v0 = vld [vmem:[%s154_s0] sm:$0xff]  ;;  %v63_v1 = vld [vmem:[%s154_s0 + $0x8] sm:$0xff] }
   0x2   :  { %v64_v2 = vld [vmem:[%s155_s1] sm:$0xff]  ;;  %v65_v3 = vld [vmem:[%s155_s1 + $0x8] sm:$0xff]  ;;  %v66_v4 = vmul.f32 0.5, %v62_v0  ;;  %v67_v5 = vmul.f32 0.5, %v63_v1 }
   0x3   :  { %v78_v6 = vadd.f32 %v65_v3, %v64_v2 }
   0x4   :  { %114 = vtanh.f32 %v66_v4 }
   0x5   :  { %116 = vtanh.f32 %v67_v5  ;;  %112 = vst [vmem:[%s156_s2 + $0x10] sm:$0xff] %v78_v6 }
   0xe   :  { %v115_v7 = vpop.eup %114 }
   0xf   :  { %v117_v8 = vpop.eup %116  ;;  %v70_v9 = vmul.f32 0.5, %v115_v7 }
  0x10   :  { %v71_v10 = vmul.f32 0.5, %v117_v8 }
  0x11   :  { %v72_v11 = vadd.f32 0.5, %v70_v9 }
  0x12   :  { %v73_v12 = vadd.f32 0.5, %v71_v10 }
  0x13   :  { %v74_v13 = vmul.f32 %v72_v11, %v64_v2 }
  0x14   :  { %v75_v14 = vmul.f32 %v73_v12, %v65_v3  ;;  %v77_v15 = vadd.f32 %v73_v12, %v72_v11 }
  0x16   :  { %v76_v16 = vadd.f32 %v75_v14, %v74_v13  ;;  %110 = vst [vmem:[%s156_s2 + $0x8] sm:$0xff] %v77_v15 }
  0x18   :  { %84 = vst [vmem:[%s156_s2] sm:$0xff] %v76_v16 }

</bundles_post_ra>
